<compile_context>
chip_gen: v5e
topology: v5e:2x2
jax: 0.10.0
libtpu: 0.0.40
codegen_flags: <defaults>
</compile_context>

<pallas_src>
import functools
import math

import jax
import jax.numpy as jnp
from jax.experimental import pallas as pl
from jax.experimental.pallas import tpu as pltpu

EPSILON = 1.0 / math.e ** 2
_LANE = 128
_SUBLANE = 8


def _round_up(x, m):
    return ((x + m - 1) // m) * m


def _chip_config():
    """Generation-aware tiling knobs (robust to running on unknown hardware)."""
    kind = ""
    try:
        kind = jax.devices()[0].device_kind.lower()
    except Exception:
        pass
    if "v7" in kind:
        cfg = dict(mxu_rows=512, min_grid_steps=4,
                   vmem_budget=32 << 20, vmem_cap=48 << 20)
    elif "v6" in kind:
        cfg = dict(mxu_rows=512, min_grid_steps=2,
                   vmem_budget=64 << 20, vmem_cap=96 << 20)
    elif "v5 lite" in kind or "v5e" in kind or "v5lite" in kind:
        cfg = dict(mxu_rows=128, min_grid_steps=2,
                   vmem_budget=64 << 20, vmem_cap=96 << 20)
    else:  # unknown generation: conservative
        cfg = dict(mxu_rows=256, min_grid_steps=2,
                   vmem_budget=24 << 20, vmem_cap=48 << 20)
    try:
        vmem_bytes = int(pltpu.get_tpu_info().vmem_capacity_bytes)
        cfg["vmem_cap"] = min(cfg["vmem_cap"], int(vmem_bytes * 0.75))
        cfg["vmem_budget"] = min(cfg["vmem_budget"], int(vmem_bytes * 0.5))
    except Exception:
        pass
    return cfg


def _vmem_per_graph_bytes(N, Din, H, Dout, adj_itemsize, wsize):
    """VMEM bytes per graph per grid step: pipelined tiles + live temporaries,
    using the (8,128)-padded VMEM footprints (not the raw HBM sizes)."""
    nl = _round_up(N, _LANE)     # adjacency lane padding in VMEM
    ns = _round_up(N, _SUBLANE)
    dl = _round_up(Din, _LANE)
    hl = _round_up(H, _LANE)
    ol = _round_up(Dout, _LANE)
    # double-buffered pipelined tiles (adj, x in f32, out in f32-ish)
    tiles = 2 * (ns * nl * adj_itemsize + ns * dl * 4 + ns * ol * 4)
    # in-kernel temporaries: adj cast, x cast, agg(f32)+agg cast, h(f32)+h cast,
    # out(f32)
    temps = (ns * nl * wsize
             + ns * dl * (wsize + 4 + wsize)
             + ns * hl * (4 + wsize)
             + ns * ol * 4)
    return tiles + temps


def _weights_vmem_bytes(Din, H, Dout, wsize):
    dsu = _round_up(Din, _SUBLANE)
    hsu = _round_up(H, _SUBLANE)
    hl = _round_up(H, _LANE)
    ol = _round_up(Dout, _LANE)
    # grid-invariant but double-buffered by default (tiny here).
    return 2 * (dsu * hl * wsize + hsu * ol * wsize
                + _SUBLANE * hl * 4 + _SUBLANE * ol * 4)


def _choose_block_batch(B, N, per_graph_bytes, weight_bytes, cfg):
    """Graphs per grid step + number of grid steps."""
    budget = max(cfg["vmem_budget"] - weight_bytes, per_graph_bytes)
    cap_vmem = max(1, budget // max(per_graph_bytes, 1))
    target = max(1, -(-cfg["mxu_rows"] // N))         # Bt*N ~ mxu_rows
    bt = max(1, min(B, cap_vmem, target))
    # keep enough grid steps for pipelining / megacore sharding
    min_steps = cfg["min_grid_steps"]
    if B >= min_steps:
        bt = min(bt, -(-B // min_steps))
    # prefer an exact divisor of B close to bt (avoids a masked tail block)
    for d in range(bt, 0, -1):
        if B % d == 0:
            if 2 * d >= bt:
                return d, B // d
            break
    return bt, -(-B // bt)     # cdiv grid: Pallas drops OOB writes of the tail


def _gin_kernel(adj_ref, x_ref, w1_ref, b1_ref, w2_ref, b2_ref, o_ref, *,
                eps, compute_dtype):
    # adj_ref: (Bt, N, N)   channel-1 adjacency (Squeezed() selected channel)
    # x_ref  : (Bt, N, Din) f32 node features
    # w1_ref : (Din, H)  b1_ref: (1, H)  w2_ref: (H, Dout)  b2_ref: (1, Dout)
    # o_ref  : (Bt, N, Dout)
    bt, n, din = x_ref.shape

    x = x_ref[...]                                   # (Bt, N, Din) f32
    adj = adj_ref[...]                               # (Bt, N, N)
    if adj.dtype != compute_dtype:
        adj = adj.astype(compute_dtype)
    xc = x if x.dtype == compute_dtype else x.astype(compute_dtype)

    # GIN aggregation: A @ x + (1 + eps) * x   (MXU in compute_dtype, accum f32)
    agg = jnp.einsum("bij,bjf->bif", adj, xc,
                     preferred_element_type=jnp.float32)
    agg = agg + (1.0 + eps) * x                      # (Bt, N, Din) f32
    # TODO(synk): if the self-loop (1+eps)*I were folded into the adjacency
    # upstream this add could be dropped; it is free filler when MXU/DMA-bound.

    # Flatten (Bt, N) -> rows so both MLP matmuls are single fat 2-D MXU dots.
    # TODO(synk): for N % 8 != 0 this flatten crosses (8,128) sublane tiles and
    # may relayout; sublane-pad N upstream in that case.
    rows = agg.reshape(bt * n, din)

    h = jnp.dot(rows.astype(compute_dtype), w1_ref[...],
                preferred_element_type=jnp.float32) + b1_ref[...]
    h = jnp.maximum(h, 0.0)

    out = jnp.dot(h.astype(compute_dtype), w2_ref[...],
                  preferred_element_type=jnp.float32) + b2_ref[...]
    out = jnp.maximum(out, 0.0)                      # GINLayer act; dropout p=0

    o_ref[...] = out.reshape(o_ref.shape).astype(o_ref.dtype)


def gin_layer(x_nbf, adj_batch, w1, b1, w2, b2, *, eps=EPSILON,
              compute_dtype=jnp.bfloat16, out_dtype=jnp.float32):
    """x_nbf: (N, B, Din), adj_batch: (B, 2, N, N) -> (N, B, Dout)."""
    N, B, Din = x_nbf.shape
    H = w1.shape[1]
    Dout = w2.shape[1]

    # (N, B, Din) -> (B, N, Din). Kept only for the PyTorch node-major interface
    # (drop both transposes if the surrounding graph is batch-major).
    x_bnf = jnp.transpose(x_nbf, (1, 0, 2)).astype(jnp.float32)

    # Weights cast once per call (tiny); adjacency is NOT cast in the wrapper —
    # pass it in bf16 from the caller to halve the dominant HBM stream.
    w1c = w1.astype(compute_dtype)
    w2c = w2.astype(compute_dtype)
    b1r = b1.reshape(1, H).astype(jnp.float32)
    b2r = b2.reshape(1, Dout).astype(jnp.float32)

    adj_itemsize = jnp.dtype(adj_batch.dtype).itemsize
    wsize = jnp.dtype(compute_dtype).itemsize
    cfg = _chip_config()

    per_graph = _vmem_per_graph_bytes(N, Din, H, Dout, adj_itemsize, wsize)
    weight_bytes = _weights_vmem_bytes(Din, H, Dout, wsize)
    Bt, steps = _choose_block_batch(B, N, per_graph, weight_bytes, cfg)

    # Raise the scoped-VMEM limit only when the step genuinely needs it
    # (defaults: 16 MiB v5e, 32 MiB v6e/v7x); cap per generation.
    step_bytes = Bt * per_graph + weight_bytes
    need = int(step_bytes * 1.25) + (2 << 20)
    vmem_limit = None
    if need > (16 << 20):
        vmem_limit = int(min(max(need, 32 << 20), cfg["vmem_cap"]))

    out_itemsize = jnp.dtype(out_dtype).itemsize
    cost = pl.CostEstimate(
        flops=int(2 * B * N * (N * Din + Din * H + H * Dout)),
        transcendentals=0,
        bytes_accessed=int(B * N * N * adj_itemsize        # adjacency channel 1
                           + B * N * Din * 4               # x in
                           + B * N * Dout * out_itemsize   # out
                           + (Din * H + H * Dout) * wsize  # weights
                           + (H + Dout) * 4),              # biases
    )

    out_bnf = pl.pallas_call(
        functools.partial(_gin_kernel, eps=eps, compute_dtype=compute_dtype),
        out_shape=jax.ShapeDtypeStruct((B, N, Dout), out_dtype),
        grid_spec=pltpu.PrefetchScalarGridSpec(
            num_scalar_prefetch=0,
            grid=(steps,),
            in_specs=[
                # adjacency channel 1 selected + squeezed here: kernel gets
                # (Bt, N, N) directly, no in-kernel squeeze/relayout.
                pl.BlockSpec((Bt, pl.Squeezed(), N, N), lambda b: (b, 1, 0, 0)),
                pl.BlockSpec((Bt, N, Din), lambda b: (b, 0, 0)),
                pl.BlockSpec((Din, H), lambda b: (0, 0)),
                pl.BlockSpec((1, H), lambda b: (0, 0)),
                pl.BlockSpec((H, Dout), lambda b: (0, 0)),
                pl.BlockSpec((1, Dout), lambda b: (0, 0)),
            ],
            out_specs=pl.BlockSpec((Bt, N, Dout), lambda b: (b, 0, 0)),
        ),
        compiler_params=pltpu.CompilerParams(
            dimension_semantics=("parallel",),
            vmem_limit_bytes=vmem_limit,
        ),
        cost_estimate=cost,
    )(adj_batch, x_bnf, w1c, b1r, w2c, b2r)

    # Back to the node-major (N, B, Dout) layout of the PyTorch module.
    return jnp.transpose(out_bnf, (1, 0, 2))


def _ref_forward(x_nbf, adj_batch, w1, b1, w2, b2, eps=EPSILON):
    x = jnp.transpose(x_nbf, (1, 0, 2))
    adj = adj_batch[:, 1, :, :].astype(jnp.float32)
    h = jnp.einsum("bij,bjf->bif", adj, x) + (1.0 + eps) * x
    h = jnp.maximum(h @ w1 + b1, 0.0)
    h = jnp.maximum(h @ w2 + b2, 0.0)
    return jnp.transpose(h, (1, 0, 2))


if __name__ == "__main__":
    key = jax.random.PRNGKey(0)
    N, B, Din, Dout = 8, 2, 16, 32
    H = Dout  # MLP hidden_dim == output_dim per GINLayer.__init__

    k_x, k_a, k_w1, k_b1, k_w2, k_b2 = jax.random.split(key, 6)

    x = jax.random.normal(k_x, (N, B, Din), dtype=jnp.float32)
    adj_batch = jax.random.uniform(k_a, (B, 2, N, N), dtype=jnp.float32)

    # Deterministic parameter init (Kaiming-uniform-ish fan_in bound, like nn.Linear)
    bound1 = 1.0 / math.sqrt(Din)
    w1 = jax.random.uniform(k_w1, (Din, H), jnp.float32, -bound1, bound1)
    b1 = jax.random.uniform(k_b1, (H,), jnp.float32, -bound1, bound1)
    bound2 = 1.0 / math.sqrt(H)
    w2 = jax.random.uniform(k_w2, (H, Dout), jnp.float32, -bound2, bound2)
    b2 = jax.random.uniform(k_b2, (Dout,), jnp.float32, -bound2, bound2)

    ref = _ref_forward(x, adj_batch, w1, b1, w2, b2)

    # Exact-semantics path (f32 MXU operands): matches the PyTorch module math.
    out_f32 = gin_layer(x, adj_batch, w1, b1, w2, b2, compute_dtype=jnp.float32)
    jax.block_until_ready(out_f32)
    assert out_f32.shape == (N, B, Dout)
    assert jnp.allclose(out_f32, ref, atol=1e-5, rtol=1e-5)

    # Performance path (bf16 MXU operands, f32 accumulation): loose tolerance.
    out_bf16 = gin_layer(x, adj_batch, w1, b1, w2, b2, compute_dtype=jnp.bfloat16)
    jax.block_until_ready(out_bf16)
    assert out_bf16.shape == (N, B, Dout)
    assert jnp.allclose(out_bf16, ref, atol=5e-2, rtol=5e-2)

    # bf16 adjacency stream (halves the dominant HBM read): loose tolerance.
    out_badj = gin_layer(x, adj_batch.astype(jnp.bfloat16), w1, b1, w2, b2,
                         compute_dtype=jnp.bfloat16)
    jax.block_until_ready(out_badj)
    assert out_badj.shape == (N, B, Dout)
    assert jnp.allclose(out_badj, ref, atol=1e-1, rtol=1e-1)

    print("KERNEL_OK")
</pallas_src>

<mosaic_0001>
module attributes {stable_mosaic.version = 11 : i64} {
  func.func @_gin_kernel(%arg0: i32, %arg1: memref<1x1x8x8xf32, #tpu.memory_space<vmem>>, %arg2: memref<1x8x16xf32, #tpu.memory_space<vmem>>, %arg3: memref<16x32xf32, #tpu.memory_space<vmem>>, %arg4: memref<1x32xf32, #tpu.memory_space<vmem>>, %arg5: memref<32x32xf32, #tpu.memory_space<vmem>>, %arg6: memref<1x32xf32, #tpu.memory_space<vmem>>, %arg7: memref<1x8x32xf32, #tpu.memory_space<vmem>>) attributes {dimension_semantics = [#tpu.dimension_semantics<parallel>], iteration_bounds = array<i64: 2>, scalar_prefetch = 0 : i64, scratch_operands = 0 : i64, tpu.core_type = #tpu.core_type<tc>, window_params = [{transform_indices = @transform_0, window_bounds = array<i64: 1, 1, 8, 8>}, {transform_indices = @transform_1, window_bounds = array<i64: 1, 8, 16>}, {pipeline_mode = #tpu.pipeline_mode<synchronous>, transform_indices = @transform_2, window_bounds = array<i64: 16, 32>}, {pipeline_mode = #tpu.pipeline_mode<synchronous>, transform_indices = @transform_3, window_bounds = array<i64: 1, 32>}, {pipeline_mode = #tpu.pipeline_mode<synchronous>, transform_indices = @transform_4, window_bounds = array<i64: 32, 32>}, {pipeline_mode = #tpu.pipeline_mode<synchronous>, transform_indices = @transform_5, window_bounds = array<i64: 1, 32>}, {transform_indices = @transform_6, window_bounds = array<i64: 1, 8, 32>}]} {
    %c0 = arith.constant 0 : index
    %c0_0 = arith.constant 0 : index
    %c0_1 = arith.constant 0 : index
    %0 = vector.load %arg2[%c0, %c0_0, %c0_1] : memref<1x8x16xf32, #tpu.memory_space<vmem>>, vector<1x8x16xf32>
    %c0_2 = arith.constant 0 : index
    %c0_3 = arith.constant 0 : index
    %c0_4 = arith.constant 0 : index
    %c0_5 = arith.constant 0 : index
    %1 = vector.load %arg1[%c0_2, %c0_3, %c0_4, %c0_5] : memref<1x1x8x8xf32, #tpu.memory_space<vmem>>, vector<1x1x8x8xf32>
    %2 = vector.shape_cast %1 : vector<1x1x8x8xf32> to vector<1x8x8xf32>
    "tpu.trace_start"() <{level = 10 : i32, message = "bij,bjf->bif"}> : () -> ()
    %cst = arith.constant dense<0.000000e+00> : vector<1x8x16xf32>
    %3 = tpu.matmul %2, %0, %cst {dimension_numbers = #tpu.dot_dimension_numbers<[2], [1], [1], [2], [0, 0, 0, 1, 1, 2], [0], [0]>} : vector<1x8x8xf32>, vector<1x8x16xf32>, vector<1x8x16xf32> -> vector<1x8x16xf32>
    "tpu.trace_stop"() : () -> ()
    %cst_6 = arith.constant 1.13533533 : f32
    %4 = vector.broadcast %cst_6 : f32 to vector<1x8x16xf32>
    %5 = arith.mulf %4, %0 : vector<1x8x16xf32>
    %6 = arith.addf %3, %5 : vector<1x8x16xf32>
    %7 = vector.shape_cast %6 : vector<1x8x16xf32> to vector<8x16xf32>
    %c0_7 = arith.constant 0 : index
    %c0_8 = arith.constant 0 : index
    %8 = vector.load %arg3[%c0_7, %c0_8] : memref<16x32xf32, #tpu.memory_space<vmem>>, vector<16x32xf32>
    %cst_9 = arith.constant dense<0.000000e+00> : vector<8x32xf32>
    %9 = tpu.matmul %7, %8, %cst_9 {dimension_numbers = #tpu.dot_dimension_numbers<[1], [0], [0], [1], [0, 0, 1, 1], [], []>} : vector<8x16xf32>, vector<16x32xf32>, vector<8x32xf32> -> vector<8x32xf32>
    %c0_10 = arith.constant 0 : index
    %c0_11 = arith.constant 0 : index
    %10 = vector.load %arg4[%c0_10, %c0_11] : memref<1x32xf32, #tpu.memory_space<vmem>>, vector<1x32xf32>
    %11 = vector.broadcast %10 : vector<1x32xf32> to vector<8x32xf32>
    %12 = arith.addf %9, %11 : vector<8x32xf32>
    %cst_12 = arith.constant 0.000000e+00 : f32
    %13 = vector.broadcast %cst_12 : f32 to vector<8x32xf32>
    %14 = arith.maximumf %12, %13 : vector<8x32xf32>
    %c0_13 = arith.constant 0 : index
    %c0_14 = arith.constant 0 : index
    %15 = vector.load %arg5[%c0_13, %c0_14] : memref<32x32xf32, #tpu.memory_space<vmem>>, vector<32x32xf32>
    %cst_15 = arith.constant dense<0.000000e+00> : vector<8x32xf32>
    %16 = tpu.matmul %14, %15, %cst_15 {dimension_numbers = #tpu.dot_dimension_numbers<[1], [0], [0], [1], [0, 0, 1, 1], [], []>} : vector<8x32xf32>, vector<32x32xf32>, vector<8x32xf32> -> vector<8x32xf32>
    %c0_16 = arith.constant 0 : index
    %c0_17 = arith.constant 0 : index
    %17 = vector.load %arg6[%c0_16, %c0_17] : memref<1x32xf32, #tpu.memory_space<vmem>>, vector<1x32xf32>
    %18 = vector.broadcast %17 : vector<1x32xf32> to vector<8x32xf32>
    %19 = arith.addf %16, %18 : vector<8x32xf32>
    %cst_18 = arith.constant 0.000000e+00 : f32
    %20 = vector.broadcast %cst_18 : f32 to vector<8x32xf32>
    %21 = arith.maximumf %19, %20 : vector<8x32xf32>
    %22 = vector.shape_cast %21 : vector<8x32xf32> to vector<1x8x32xf32>
    %c0_19 = arith.constant 0 : index
    %c0_20 = arith.constant 0 : index
    %c0_21 = arith.constant 0 : index
    %23 = vector.load %arg7[%c0_19, %c0_20, %c0_21] : memref<1x8x32xf32, #tpu.memory_space<vmem>>, vector<1x8x32xf32>
    tpu.vector_store %arg7[%c0_19, %c0_20, %c0_21], %22 {strides = array<i32>} : memref<1x8x32xf32, #tpu.memory_space<vmem>>, vector<1x8x32xf32>,
    return
  }
  func.func @transform_0(%arg0: i32) -> (i32, i32, i32, i32) {
    %c1_i32 = arith.constant 1 : i32
    %c0_i32 = arith.constant 0 : i32
    %c0_i32_0 = arith.constant 0 : i32
    %c0_i32_1 = arith.constant 0 : i32
    return %arg0, %c1_i32, %c0_i32, %c0_i32_0 : i32, i32, i32, i32
  }
  func.func @transform_1(%arg0: i32) -> (i32, i32, i32) {
    %c0_i32 = arith.constant 0 : i32
    %c0_i32_0 = arith.constant 0 : i32
    %c0_i32_1 = arith.constant 0 : i32
    return %arg0, %c0_i32, %c0_i32_0 : i32, i32, i32
  }
  func.func @transform_2(%arg0: i32) -> (i32, i32) {
    %c0_i32 = arith.constant 0 : i32
    %c0_i32_0 = arith.constant 0 : i32
    %c0_i32_1 = arith.constant 0 : i32
    return %c0_i32, %c0_i32_0 : i32, i32
  }
  func.func @transform_3(%arg0: i32) -> (i32, i32) {
    %c0_i32 = arith.constant 0 : i32
    %c0_i32_0 = arith.constant 0 : i32
    %c0_i32_1 = arith.constant 0 : i32
    return %c0_i32, %c0_i32_0 : i32, i32
  }
  func.func @transform_4(%arg0: i32) -> (i32, i32) {
    %c0_i32 = arith.constant 0 : i32
    %c0_i32_0 = arith.constant 0 : i32
    %c0_i32_1 = arith.constant 0 : i32
    return %c0_i32, %c0_i32_0 : i32, i32
  }
  func.func @transform_5(%arg0: i32) -> (i32, i32) {
    %c0_i32 = arith.constant 0 : i32
    %c0_i32_0 = arith.constant 0 : i32
    %c0_i32_1 = arith.constant 0 : i32
    return %c0_i32, %c0_i32_0 : i32, i32
  }
  func.func @transform_6(%arg0: i32) -> (i32, i32, i32) {
    %c0_i32 = arith.constant 0 : i32
    %c0_i32_0 = arith.constant 0 : i32
    %c0_i32_1 = arith.constant 0 : i32
    return %arg0, %c0_i32, %c0_i32_0 : i32, i32, i32
  }
}

</mosaic_0001>

<bundles_post_ra>
// kernel: tpu_custom_call.1
= control target key start
LH: loop header
LB: loop body
LE: loop exit
PB: predicated region body
PF: predicated region fallthrough
CT: control target
= control target key end

     0   :  { %s1092_s0 = inlined_call_operand.hbm [shape: f32[2,2,8,8], index: 0, kind: input, shape index: {}]   ;;  %s1093_s1 = inlined_call_operand.hbm [shape: f32[2,8,16], index: 1, kind: input, shape index: {}]   ;;  %s1094_s2 = inlined_call_operand.hbm [shape: f32[16,32], index: 2, kind: input, shape index: {}]   ;;  %s1095_s3 = inlined_call_operand.vmem [shape: f32[1,32], index: 3, kind: input, shape index: {}]   ;;  %s1096_s4 = inlined_call_operand.hbm [shape: f32[32,32], index: 4, kind: input, shape index: {}]   ;;  %s1097_s5 = inlined_call_operand.vmem [shape: f32[1,32], index: 5, kind: input, shape index: {}]   ;;  %s1098_s6 = inlined_call_operand.hbm [shape: f32[2,8,32], index: 6, kind: output, shape index: {}]  }
   0x1   :  { %1102 = sst [smem:[#allocation19_spill]] %s1094_s2 }
   0x2   :  { %1103 = sst [smem:[#allocation20_spill]] %s1096_s4 }
   0x3   :  { %11 = vsyncpa [#allocation3], 0 }
   0x4   :  { %13 = vsyncpa [#allocation3 + $0x1], 0 }
   0x5   :  { %14 = vsyncpa [#allocation6], 0 }
   0x6   :  { %16 = vsyncpa [#allocation6 + $0x1], 0 }
   0x7   :  { %17 = vsyncpa [#allocation9], 0 }
   0x8   :  { %18 = vsyncpa [#allocation4], 0 }
   0x9   :  { %20 = vsyncpa [#allocation4 + $0x1], 0  ;;  %s904_s21 = smov 0   ;;  %s906_s22 = smov 0  }
   0xa   :  { %s908_s23 = smov 0   ;;  %s910_s24 = smov 0  }
   0xb LB: > { %1104 = sst [smem:[#allocation16_spill]] %s859_s23  ;;  %s928_s28 = sadd.s32 4294967295, %s863_s24   ;;  %s863_s24 = sphi %s910_s24, %s1116_s24   ;;  %s859_s23 = sphi %s908_s23, %s1118_s23   ;;  %s855_s22 = sphi %s906_s22, %s1120_s22   ;;  %s851_s21 = sphi %s904_s21, %s1119_s21  }
   0xc   : > { %s1105_s2 = sld [smem:[#allocation19_spill]]  ;;  %p566_p0 = scmp.ge.s32.totalorder %s863_s24, 1 }
   0xd   : > { %p47_p1 = scmp.eq.s32.totalorder %s928_s28, 0  ;;  %p193_p2 = scmp.lt.s32.totalorder %s863_s24, 3 }
   0xe   : > { %s865_s30 = smov [#allocation7]   ;;  %s1107_s4 = sld [smem:[#allocation20_spill]] }
   0xf   : > { %p933_p3 = pnand %p566_p0, %p193_p2  ;;  %s206_s7 = sshll.u32 %s865_s30, 4  ;;  %s207_s7 = int_to_ptr.vmem [resolvable:$true] %s206_s7 }
  0x10   : > { %s866_s11 = smov [#allocation8]   ;;  %s867_s13 = smov 128  }
  0x11   : > { %p603_p4 = pneg %p933_p3  ;;  %s223_s12 = sshll.u32 %s866_s11, 4  ;;  %s224_s12 = int_to_ptr.vmem [resolvable:$true] %s223_s12 }
  0x12   : > { %s204_s27 = sshll.u32 %s1105_s2, 4  ;;  %s868_s14 = smov 8   ;;  %s205_s27 = int_to_ptr.hbm [resolvable:$true] %s204_s27 }
  0x13   : > { %p604_p6 = pnand %p603_p4, %p47_p1  ;;  %s565_s15 = sadd.s32 4294967294, %s863_s24  }
  0x14   : > { %s221_s10 = sshll.u32 %s1107_s4, 4  ;;  %s947_s16 = sadd.s32 1, %s863_s24   ;;  %s222_s10 = int_to_ptr.hbm [resolvable:$true] %s221_s10 }
  0x15   : > { %606 = dma.hbm_to_vmem [thread:$0]  (!%p604_p6), %s205_s27, 256, %s207_s7, [#allocation6], %s867_s13, %s867_s13, %s868_s14  }
  0x16   : > { %609 = dma.hbm_to_vmem [thread:$0]  (!%p604_p6), %s222_s10, 512, %s224_s12, [#allocation9], %s867_s13, %s867_s13, %s868_s14  }
  0x17   : > { %1108 = sst [smem:[#allocation17_spill]] %s947_s16  ;;  %s30_s17 = ssub.s32 %s863_s24, %s947_s16 }
  0x18   : > { %s33_s18 = sadd.s32 1, %s859_s23  ;;  %p31_p7 = scmp.eq.s32.totalorder %s30_s17, 0 }
  0x19   : > { %p40_p8 = scmp.ne.s32.totalorder %s859_s23, %s855_s22  ;;  %p41_p9 = scmp.eq.s32.totalorder %s863_s24, 0 }
  0x1a   : > { %p46_p10 = scmp.ne.s32.totalorder %s855_s22, %s851_s21  ;;  %p180_p13 = scmp.eq.s32.totalorder %s928_s28, 1 }
  0x1b   : > { %s958_s19 = scalar_select %p31_p7, %s859_s23, %s33_s18  }
  0x1c   : > { %p960_p11 = por %p41_p9, %p40_p8  ;;  %p966_p12 = por %p47_p1, %p46_p10 }
  0x1d   : > { %1109 = sst [smem:[#allocation18_spill]] %s958_s19  ;;  %p186_p0 = scmp.eq.s32.totalorder %s565_s15, 1 }
  0x1e   : > { %p623_p2 = scmp.lt.s32.totalorder %s863_s24, 2  ;;  %s240_s26 = sand.u32 1, %s859_s23  }
  0x1f   : > { %p973_p4 = por %p180_p13, %p40_p8  ;;  %p977_p6 = por %p186_p0, %p46_p10 }
  0x20   : > { %s981_s7 = sshll.u32 %s240_s26, 3  ;;  %s588_s8 = sshll.u32 %s863_s24, 4 }
  0x21   : > { %s484_s11 = scalar_lea.hbm %s1092_s0, %s588_s8  ;;  %s244_s12 = scalar_lea.vmem [#allocation2], %s981_s7 }
  0x22   : > { %s254_s13 = sshll.u32 %s244_s12, 4  ;;  %s485_s14 = scalar_lea.hbm %s484_s11, 8  ;;  %s255_s13 = int_to_ptr.vmem [resolvable:$true] %s254_s13 }
  0x23   : > { %s252_s15 = sshll.u32 %s485_s14, 4  ;;  %p990_p7 = pnand %p623_p2, %p960_p11  ;;  %s253_s15 = int_to_ptr.hbm [resolvable:$true] %s252_s15 }
  0x24   : > { %s261_s18 = sand.u32 1, %s863_s24   ;;  %s241_s2 = scalar_lea.sflag [#allocation3], %s240_s26 }
  0x25   : > { %s725_s4 = sshra.s32 %s253_s15, 4  ;;  %p729_p9 = pneg %p990_p7  ;;  %s726_s4 = int_to_ptr.hbm [resolvable:$true] %s725_s4 }
  0x26   : > { %s727_s19 = scalar_lea.hbm %s726_s4, 8  ;;  %s732_s9 = scalar_lea.hbm %s1092_s0, 32 }
  0x27   : > { %p728_p8 = scmp.ne.s32.totalorder %s726_s4, %s727_s19  ;;  %p733_p11 = scmp.lt.s32.totalorder %s726_s4, %s1092_s0 }
  0x28   : > { %p734_p0 = scmp.lt.s32.totalorder %s732_s9, %s727_s19 }
  0x29   : > { %p730_p10 = pnand %p729_p9, %p728_p8 }
  0x2a   : > { %p735_p2 = por %p734_p0, %p733_p11 }
  0x2b   : > { %p731_p13 = pneg %p730_p10 }
  0x2d   : > { %p736_p5 = pnand %p735_p2, %p731_p13 }
  0x2f   : > { %739 = shalt.err (!%p736_p5)
}
  0x30   : > { %613 = dma.hbm_to_vmem [thread:$0]  (!%p990_p7), %s253_s15, 128, %s255_s13, %s241_s2  }
  0x31   : > { %s574_s26 = sshll.u32 %s863_s24, 3  ;;  %s265_s8 = scalar_lea.vmem [#allocation5], %s981_s7 }
  0x32   : > { %s269_s20 = scalar_lea.hbm %s1093_s1, %s574_s26  ;;  %s273_s23 = sshll.u32 %s265_s8, 4  ;;  %s274_s23 = int_to_ptr.vmem [resolvable:$true] %s273_s23 }
  0x33   : > { %s271_s16 = sshll.u32 %s269_s20, 4  ;;  %s262_s4 = scalar_lea.sflag [#allocation6], %s261_s18  ;;  %s272_s16 = int_to_ptr.hbm [resolvable:$true] %s271_s16 }
  0x34   : > { %s755_s19 = sshra.s32 %s272_s16, 4  ;;  %s762_s15 = scalar_lea.hbm %s1093_s1, 16  ;;  %s756_s19 = int_to_ptr.hbm [resolvable:$true] %s755_s19 }
  0x35   : > { %s757_s9 = scalar_lea.hbm %s756_s19, 8  ;;  %p763_p13 = scmp.lt.s32.totalorder %s756_s19, %s1093_s1 }
  0x36   : > { %p758_p5 = scmp.ne.s32.totalorder %s756_s19, %s757_s9  ;;  %p764_p11 = scmp.lt.s32.totalorder %s762_s15, %s757_s9 }
  0x38   : > { %p760_p8 = pnand %p758_p5, %p729_p9  ;;  %p765_p0 = por %p764_p11, %p763_p13 }
  0x3a   : > { %p761_p10 = pneg %p760_p8 }
  0x3c   : > { %p766_p2 = pnand %p765_p0, %p761_p10 }
  0x3e   : > { %769 = shalt.err (!%p766_p2)
}
  0x3f   : > { %616 = dma.hbm_to_vmem [thread:$0]  (!%p990_p7), %s272_s16, 128, %s274_s23, %s262_s4  }
  0x40   : > { %282 = sbr.rel (%p933_p3) target bundleno = 476 (0x1dc), region = 44  ;;  %s1027_s7 = sand.u32 (!%p933_p3), 1, %s855_s22  }
  0x41   : > { %s1030_s18 = sshll.u32 (!%p933_p3), %s1027_s7, 3  ;;  %s285_s26 = scalar_lea.sflag (!%p933_p3), [#allocation3], %s1027_s7 }
  0x42   : > { %s288_s12 = scalar_lea.vmem (!%p933_p3), [#allocation2], %s1030_s18 }
  0x45   : > { %830 = dma.done.wait (%p966_p12), %s285_s26, 128  }
  0x46   : > { %832 = vsyncadd (%p966_p12), %s285_s26, 4294967168  ;;  %s294_s23 = sand.u32 1, %s928_s28   ;;  %s298_s16 = scalar_lea.vmem [#allocation5], %s1030_s18 }
  0x47   : > { %s295_s29 = scalar_lea.sflag [#allocation6], %s294_s23 }
  0x48   : > { %834 = dma.done.wait (%p966_p12), %s295_s29, 128  }
  0x49   : > { %836 = vsyncadd (%p966_p12), %s295_s29, 4294967168 }
  0x4a   : > { %838 = dma.done.wait (%p47_p1), [#allocation6], 256  }
  0x4b   : > { %840 = vsyncadd (%p47_p1), [#allocation6], 4294967040 }
  0x4c   : > { %842 = dma.done.wait (%p47_p1), [#allocation9], 512  }
  0x4d   : > { %844 = vsyncadd (%p47_p1), [#allocation9], 4294966784  ;;  %vm346_vm0 = vcmask 64512   ;;  %v343_v0 = vld [vmem:[%s298_s16] sm:$0xff]  ;;  %v344_v1 = vld [vmem:[%s288_s12] sm:$0xff]  ;;  %vm376_vm1 = vcmask 130048  }
  0x4e   : > { %365 = vmatpush.msra.mxu0 %v343_v0  ;;  %v371_v2 = vld [vmem:[#allocation7 + $0x8] sm:$0xff]  ;;  %v370_v3 = vld [vmem:[#allocation7] sm:$0xff]  ;;  %v345_v5 = vmul.f32 1.1353353, %v343_v0  ;;  %v402_v9 = vld [vmem:[#allocation8 + $0x8] sm:$0xff]  ;;  %vm409_vm2 = vcmask 261120  }
  0x4f   : > { %581 = vmatmul.msk.f32.vlgmr.msra.gmra.mxu0 %vm346_vm0, %v344_v1  ;;  %394 = vmatpush.msra.mxu1 %v371_v2  ;;  %v404_v4 = vld [vmem:[#allocation8 + $0x18] sm:$0xff]  ;;  %v403_v8 = vld [vmem:[#allocation8 + $0x10] sm:$0xff]  ;;  %v401_v10 = vld [vmem:[#allocation8] sm:$0xff]  ;;  %s585_s14 = sshll.u32 %s928_s28, 3  ;;  %s342_s2 = scalar_lea.vmem [#allocation10], %s1030_s18 }
  0x50   : > { %425 = vmatpush.msra.mxu2 %v404_v4  ;;  %v663_v11 = vld [vmem:[%s1095_s3] ss:$0 sm:$0xff]  ;;  %s446_s9 = scalar_lea.hbm %s1098_s6, %s585_s14  ;;  %s448_s13 = sshll.u32 %s342_s2, 4  ;;  %s449_s13 = int_to_ptr.vmem [resolvable:$true] %s448_s13 }
  0x51   : > { %395 = vmatpush.msra.mxu1 %v370_v3  ;;  %v664_v15 = vld [vmem:[%s1097_s5] ss:$0 sm:$0xff]  ;;  %s450_s15 = sshll.u32 %s446_s9, 4  ;;  %s436_s10 = scalar_lea.sflag [#allocation4], %s1027_s7  ;;  %s451_s15 = int_to_ptr.hbm [resolvable:$true] %s450_s15 }
  0x52   : > { %426 = vmatpush.msra.mxu2 %v403_v8  ;;  %s799_s28 = sshra.s32 %s451_s15, 4  ;;  %s805_s23 = scalar_lea.hbm %s1098_s6, 16  ;;  %s800_s28 = int_to_ptr.hbm [resolvable:$true] %s799_s28 }
  0x53   : > { %s801_s11 = scalar_lea.hbm %s800_s28, 8  ;;  %p806_p7 = scmp.lt.s32.totalorder %s800_s28, %s1098_s6 }
  0x54   : > { %427 = vmatpush.msra.mxu2 %v402_v9  ;;  %p802_p1 = scmp.ne.s32.totalorder %s800_s28, %s801_s11  ;;  %p807_p9 = scmp.lt.s32.totalorder %s805_s23, %s801_s11 }
  0x56   : > { %428 = vmatpush.msra.mxu2 %v401_v10  ;;  %p803_p3 = pnand %p802_p1, %p973_p4  ;;  %p808_p5 = por %p807_p9, %p806_p7 }
  0x58   : > { %p804_p12 = pneg %p803_p3 }
  0x5a   : > { %p809_p8 = pnand %p808_p5, %p804_p12 }
  0xcc   : > { %v367_v6 = vpop.f32.mrf.mxu0 }
  0xcd   : > { %v368_v7 = vadd.f32 %v367_v6, %v345_v5 }
  0xcf   : > { %582 = vmatmul.msk.f32.vlgmr.msra.gmra.mxu1 %vm376_vm1, %v368_v7 }
 0x14c   : > { %v397_v12 = vpop.f32.mrf.mxu1 }
 0x14d   : > { %v398_v13 = vadd.f32 %v663_v11, %v397_v12 }
 0x14f   : > { %v400_v14 = vmax.f32 %v398_v13, 0.0 }
 0x151   : > { %583 = vmatmul.msk.f32.vlgmr.msra.gmra.mxu2 %vm409_vm2, %v400_v14 }
 0x1d4   : > { %v430_v16 = vpop.f32.mrf.mxu2 }
 0x1d5   : > { %v431_v17 = vadd.f32 %v664_v15, %v430_v16 }
 0x1d7   : > { %v433_v18 = vmax.f32 %v431_v17, 0.0 }
 0x1d9   : > { %434 = vst.msk [vmem:[%s342_s2] sm:$0xff] %vm409_vm2, %v433_v18 }
 0x1da   : > { %812 = shalt.err (!%p809_p8)
}
 0x1db   : > { %601 = dma.vmem_to_hbm [thread:$0]  (%p973_p4), %s449_s13, 128, %s451_s15, %s436_s10  }
 0x1dc PF: > { %s462_s7 = sand.u32 1, %s851_s21   ;;  %p1115_p10 = scmp.ge.s32.totalorder %s863_s24, 2 }
 0x1dd   : > { %s463_s16 = scalar_lea.sflag [#allocation4], %s462_s7 }
 0x1de   : > { %p618_p13 = pnand %p1115_p10, %p977_p6 }
 0x1e0   : > { %p619_p11 = pneg %p618_p13 }
 0x1e2   : > { %846 = dma.done.wait (%p619_p11), %s463_s16, 128  }
 0x1e3   : > { %848 = vsyncadd (%p619_p11), %s463_s16, 4294967168  ;;  %s1116_s24 = sld [smem:[#allocation17_spill]]  ;;  %s1119_s21 = smov %s855_s22 }
 0x1e4   : > { %s1117_s25 = sld [smem:[#allocation16_spill]] }
 0x1e5   : > { %s1118_s23 = sld [smem:[#allocation18_spill]] }
 0x1e9   : > { %p23_p0 = scmp.ge.s32.totalorder %s1116_s24, 4  }
 0x1ea   : > { %s1120_s22 = smov %s1117_s25 }
 0x1eb   :  { %25 = sbr.rel (!%p23_p0) target bundleno = 11 (0xb), region = 110 }
 0x1f0   :  { %469 = vsyncpa [#allocation3], 1 }
 0x1f1   :  { %471 = vsyncpa [#allocation3 + $0x1], 1 }
 0x1f2   :  { %472 = vsyncpa [#allocation6], 1 }
 0x1f3   :  { %474 = vsyncpa [#allocation6 + $0x1], 1 }
 0x1f4   :  { %475 = vsyncpa [#allocation9], 1 }
 0x1f5   :  { %476 = vsyncpa [#allocation4], 1 }
 0x1f6   :  { %478 = vsyncpa [#allocation4 + $0x1], 1 }

</bundles_post_ra>
